<compile_context>
chip_gen: v7x
topology: tpu7x:2x2x1
jax: 0.10.0
libtpu: 0.0.40
codegen_flags: <defaults>
</compile_context>

<pallas_src>
import functools

import jax
import jax.numpy as jnp
from jax.experimental import pallas as pl
from jax.experimental.pallas import tpu as pltpu

EPS = 1e-5            # nn.LayerNorm default
_TILE_N_CAP = 2048    # rows; keeps per-step DMA >> ~0.35us per-grid-step overhead


def _round_up(v, m):
    return (v + m - 1) // m * m


def _cdiv(a, b):
    return -(-a // b)


def _vmem_budget_and_limit():
    """Generation-aware VMEM budget (tile sizing) and scoped limit (compiler)."""
    cap = 64 * 1024 * 1024                    # conservative fallback = v7x per-TC VMEM
    try:
        cap = int(pltpu.get_tpu_info().vmem_capacity_bytes)
    except Exception:
        pass
    cap = min(max(cap, 16 * 1024 * 1024), 128 * 1024 * 1024)
    return int(cap * 0.55), int(cap * 0.75)   # (budget for tile math, vmem_limit_bytes)


def _pick_tile_n(n_rows, hidden, latent, budget, x_buffers):
    """Row-tile size from the VMEM budget + a grid-step heuristic for v7x megacore."""
    # Resident bytes that don't scale with the row tile: single-buffered bf16 weights
    # + the f32 (8, L) parameter slab.
    fixed = (hidden * latent + latent * latent) * 2 + 8 * latent * 4
    avail = max(budget - fixed, 4 * 1024 * 1024)
    # Per-row bytes: x tile (bf16, x_buffers deep) + out tile (bf16, double-buffered)
    # + f32 intermediates (xf / h / y2) — conservative (ignores sub-block reuse).
    per_row = x_buffers * hidden * 2 + 2 * latent * 2 + (hidden + 2 * latent) * 4
    tn_cap = max(16, min(_TILE_N_CAP, (avail // per_row) // 16 * 16))

    if n_rows <= 256:                          # tiny input: one step
        return min(tn_cap, _round_up(n_rows, 16))

    # Step count: >= 8 for pipelining and the 2-TC v7x megacore split, kept even for
    # core balance, but never shrink tiles below ~256 rows nor exceed the VMEM cap.
    max_useful_steps = max(1, n_rows // 256)
    steps = min(max(8, _cdiv(n_rows, tn_cap)), max_useful_steps)
    steps = max(steps, _cdiv(n_rows, tn_cap))
    if steps > 1 and steps % 2:
        steps += 1
    rows_per_step = _cdiv(n_rows, steps)
    gran = 64 if rows_per_step >= 128 else 16  # 64 keeps the 4-way sub-chunking legal
    return max(16, _round_up(rows_per_step, gran))


def _pick_num_sub(tn):
    """In-kernel sub-chunk count: overlap VPU LayerNorm work with MXU matmuls."""
    for ns in (4, 2):
        if tn % ns == 0 and (tn // ns) % 16 == 0 and (tn // ns) >= 128:
            return ns
    return 1


def _latent_projector_kernel(x_ref, w1g_ref, w2t_ref, p_ref, o_ref, *,
                             n_sub, sub_rows, inv_h, inv_l):
    # x_ref: (TN, H) bf16 row tile; weights/params fully resident (Buffered(1)).
    w1g = w1g_ref[...]           # (H, L) bf16 : diag(g1) @ W1^T
    w2t = w2t_ref[...]           # (L, L) bf16 : W2^T
    bias1 = p_ref[0:1, :]        # (1, L) f32  : b1 @ W1^T (ln_1 beta folded)
    g2 = p_ref[1:2, :]           # (1, L) f32  : ln_2 gamma
    b2 = p_ref[2:3, :]           # (1, L) f32  : ln_2 beta

    # Static unroll over sub-blocks: one basic block, LLO co-issues the MXU matmuls
    # of one sub-block with the VPU/XLU/EUP LayerNorm chain of its neighbours.
    for s in range(n_sub):
        r0 = s * sub_rows
        x = x_ref[r0:r0 + sub_rows, :]                       # bf16 (sub_rows, H)
        xf = x.astype(jnp.float32)

        # ---- ln_1, one-pass stats (gamma/beta already folded into w1g / bias1) ----
        mu1 = jnp.sum(xf, axis=-1, keepdims=True) * inv_h
        m2 = jnp.sum(xf * xf, axis=-1, keepdims=True) * inv_h
        var1 = jnp.maximum(m2 - mu1 * mu1, 0.0)
        y1 = ((xf - mu1) * jax.lax.rsqrt(var1 + EPS)).astype(x.dtype)

        # ---- linear1 (MXU, f32 accumulate) + folded ln_1 beta ----------------------
        h = jnp.dot(y1, w1g, preferred_element_type=jnp.float32) + bias1

        # ---- ln_2, one-pass stats --------------------------------------------------
        mu2 = jnp.sum(h, axis=-1, keepdims=True) * inv_l
        hm2 = jnp.sum(h * h, axis=-1, keepdims=True) * inv_l
        var2 = jnp.maximum(hm2 - mu2 * mu2, 0.0)
        y2 = (h - mu2) * jax.lax.rsqrt(var2 + EPS) * g2 + b2

        # ---- residual (bf16, as in the PyTorch module) + linear2 (MXU) -------------
        r = x + y2.astype(x.dtype)
        o_ref[r0:r0 + sub_rows, :] = jnp.dot(
            r, w2t, preferred_element_type=jnp.float32).astype(o_ref.dtype)


def prepare_latent_projector_params(w1, w2, g1, b1, g2, b2):
    """One-time parameter prep (outside the hot path / once per weight update).

    w1: (L, H), w2: (L, L) in PyTorch nn.Linear (out, in) layout; both bias=False.
    Returns (w1g_t, w2t, pslab):
      w1g_t = diag(g1) @ W1^T              (H, L) bf16
      w2t   = W2^T                         (L, L) bf16
      pslab = [b1 @ W1^T ; g2 ; b2 ; 0...] (8, L) f32  — one DMA, one resident buffer
    """
    L, H = w1.shape
    w1t_f32 = w1.astype(jnp.float32).T                                  # (H, L)
    w1g_t = (g1.astype(jnp.float32)[:, None] * w1t_f32).astype(w1.dtype)
    bias1 = b1.astype(jnp.float32) @ w1t_f32                            # (L,)
    pslab = jnp.zeros((8, L), jnp.float32)
    pslab = pslab.at[0].set(bias1)
    pslab = pslab.at[1].set(g2.astype(jnp.float32))
    pslab = pslab.at[2].set(b2.astype(jnp.float32))
    return w1g_t, w2.T, pslab


def latent_projector(x, params, *, tile_n=None, x_buffers=2):
    """x: (..., H) bf16, features last.  params: prepare_latent_projector_params output.

    x_buffers: input pipeline depth for the activation tiles (2 = default double
    buffering; sweep 3 on v7x where HBM is fast and per-step compute is short).
    """
    w1g_t, w2t, pslab = params
    orig_shape = x.shape
    H = orig_shape[-1]
    L = w2t.shape[0]
    assert H == w1g_t.shape[0] and w1g_t.shape[1] == L
    assert H == L, "forward() of LatentProjector only works when hidden == latent"
    # TODO(synk): for large H/L (bf16 weights > ~half of per-TC VMEM, i.e. earlier on
    # v7x's 64 MiB) add a K-tiled variant (trailing 'arbitrary' grid axis + f32 VMEM
    # accumulator) instead of keeping both weights fully resident.

    x2d = x.reshape(-1, H)
    N = x2d.shape[0]

    budget, vmem_limit = _vmem_budget_and_limit()
    tn = tile_n if tile_n is not None else _pick_tile_n(N, H, L, budget, x_buffers)
    tn = max(16, _round_up(int(tn), 16))
    tn = min(tn, _round_up(N, 16))
    grid = (_cdiv(N, tn),)                      # tail tile handled by masked stores

    n_sub = _pick_num_sub(tn)
    kernel = functools.partial(_latent_projector_kernel,
                               n_sub=n_sub, sub_rows=tn // n_sub,
                               inv_h=1.0 / H, inv_l=1.0 / L)

    const = dict(pipeline_mode=pl.Buffered(1))  # grid-invariant -> single buffer
    x_kw = {} if x_buffers == 2 else dict(pipeline_mode=pl.Buffered(int(x_buffers)))

    out = pl.pallas_call(
        kernel,
        out_shape=jax.ShapeDtypeStruct((N, L), x.dtype),
        grid_spec=pltpu.PrefetchScalarGridSpec(
            num_scalar_prefetch=0,
            grid=grid,
            in_specs=[
                pl.BlockSpec((tn, H), lambda i: (i, 0), **x_kw),   # x row tile (pipelined)
                pl.BlockSpec((H, L), lambda i: (0, 0), **const),   # diag(g1) @ W1^T
                pl.BlockSpec((L, L), lambda i: (0, 0), **const),   # W2^T
                pl.BlockSpec((8, L), lambda i: (0, 0), **const),   # f32 param slab
            ],
            out_specs=pl.BlockSpec((tn, L), lambda i: (i, 0)),
        ),
        compiler_params=pltpu.CompilerParams(
            dimension_semantics=("parallel",),   # v7x megacore shards the row axis
            vmem_limit_bytes=vmem_limit),
    )(x2d, w1g_t, w2t, pslab)

    return out.reshape(*orig_shape[:-1], L)


def _reference(x, w1, w2, g1, b1, g2, b2):
    """Pure-JAX reference of the unfused PyTorch forward (original params)."""
    def ln(v, g, b):
        vf = v.astype(jnp.float32)
        mu = vf.mean(-1, keepdims=True)
        var = ((vf - mu) ** 2).mean(-1, keepdims=True)
        return ((vf - mu) * jax.lax.rsqrt(var + EPS) * g.astype(jnp.float32)
                + b.astype(jnp.float32))
    y1 = ln(x, g1, b1).astype(x.dtype)
    h = jnp.dot(y1, w1.T, preferred_element_type=jnp.float32)
    y2 = ln(h, g2, b2)
    r = x + y2.astype(x.dtype)
    return jnp.dot(r, w2.T, preferred_element_type=jnp.float32).astype(x.dtype)


if __name__ == "__main__":
    batch, seq = 2, 8
    hidden_size = latent_size = 128      # must be equal for forward() to work

    key = jax.random.PRNGKey(0)
    kx, kw1, kw2, kg1, kb1, kg2, kb2, kx2, kx3 = jax.random.split(key, 9)

    # Deterministic bf16 parameters (linear std=0.02 as in _init_weights; LN params
    # perturbed from gamma=1/beta=0 so the gamma/beta folding path is exercised).
    w1 = (0.02 * jax.random.normal(kw1, (latent_size, hidden_size))).astype(jnp.bfloat16)
    w2 = (0.02 * jax.random.normal(kw2, (latent_size, latent_size))).astype(jnp.bfloat16)
    g1 = (1.0 + 0.05 * jax.random.normal(kg1, (hidden_size,))).astype(jnp.bfloat16)
    b1 = (0.05 * jax.random.normal(kb1, (hidden_size,))).astype(jnp.bfloat16)
    g2 = (1.0 + 0.05 * jax.random.normal(kg2, (latent_size,))).astype(jnp.bfloat16)
    b2 = (0.05 * jax.random.normal(kb2, (latent_size,))).astype(jnp.bfloat16)

    params = prepare_latent_projector_params(w1, w2, g1, b1, g2, b2)

    # --- test 1: small (B, T, H) input, single row tile, auto tiling --------------
    x = jax.random.normal(kx, (batch, seq, hidden_size)).astype(jnp.bfloat16)
    out = jax.block_until_ready(latent_projector(x, params))
    assert out.shape == (batch, seq, latent_size)
    assert out.dtype == jnp.bfloat16
    ref = _reference(x.reshape(-1, hidden_size), w1, w2, g1, b1, g2, b2)
    err = jnp.max(jnp.abs(out.reshape(-1, latent_size).astype(jnp.float32)
                          - ref.astype(jnp.float32)))
    assert float(err) < 5e-2, f"mismatch vs reference (test 1): {err}"

    # --- test 2: ragged N with an explicit small tile -> multi-step grid + masked
    #             tail tile (no wrapper-side padding / slicing) ---------------------
    x_rag = jax.random.normal(kx2, (40, hidden_size)).astype(jnp.bfloat16)
    out2 = jax.block_until_ready(latent_projector(x_rag, params, tile_n=16))  # grid=(3,)
    ref2 = _reference(x_rag, w1, w2, g1, b1, g2, b2)
    assert out2.shape == (40, latent_size)
    err2 = jnp.max(jnp.abs(out2.astype(jnp.float32) - ref2.astype(jnp.float32)))
    assert float(err2) < 5e-2, f"mismatch vs reference (test 2): {err2}"

    # --- test 3: medium ragged N, auto tiling -> even-step grid, in-kernel
    #             sub-chunking and a masked tail tile ------------------------------
    x_med = jax.random.normal(kx3, (600, hidden_size)).astype(jnp.bfloat16)
    out3 = jax.block_until_ready(latent_projector(x_med, params))
    ref3 = _reference(x_med, w1, w2, g1, b1, g2, b2)
    assert out3.shape == (600, latent_size)
    err3 = jnp.max(jnp.abs(out3.astype(jnp.float32) - ref3.astype(jnp.float32)))
    assert float(err3) < 5e-2, f"mismatch vs reference (test 3): {err3}"

    print("KERNEL_OK")
</pallas_src>

<mosaic_0001>
module attributes {stable_mosaic.version = 11 : i64} {
  func.func @_latent_projector_kernel(%arg0: i32, %arg1: memref<16x128xbf16, #tpu.memory_space<vmem>>, %arg2: memref<128x128xbf16, #tpu.memory_space<vmem>>, %arg3: memref<128x128xbf16, #tpu.memory_space<vmem>>, %arg4: memref<8x128xf32, #tpu.memory_space<vmem>>, %arg5: memref<16x128xbf16, #tpu.memory_space<vmem>>) attributes {dimension_semantics = [#tpu.dimension_semantics<parallel>], iteration_bounds = array<i64: 1>, scalar_prefetch = 0 : i64, scratch_operands = 0 : i64, tpu.core_type = #tpu.core_type<tc>, window_params = [{transform_indices = @transform_0, window_bounds = array<i64: 16, 128>}, {pipeline_mode = #tpu.pipeline_mode<synchronous>, transform_indices = @transform_1, window_bounds = array<i64: 128, 128>}, {pipeline_mode = #tpu.pipeline_mode<synchronous>, transform_indices = @transform_2, window_bounds = array<i64: 128, 128>}, {pipeline_mode = #tpu.pipeline_mode<synchronous>, transform_indices = @transform_3, window_bounds = array<i64: 8, 128>}, {transform_indices = @transform_4, window_bounds = array<i64: 16, 128>}]} {
    %c0 = arith.constant 0 : index
    %c0_0 = arith.constant 0 : index
    %0 = vector.load %arg2[%c0, %c0_0] : memref<128x128xbf16, #tpu.memory_space<vmem>>, vector<128x128xbf16>
    %c0_1 = arith.constant 0 : index
    %c0_2 = arith.constant 0 : index
    %1 = vector.load %arg3[%c0_1, %c0_2] : memref<128x128xbf16, #tpu.memory_space<vmem>>, vector<128x128xbf16>
    %c0_3 = arith.constant 0 : index
    %c0_4 = arith.constant 0 : index
    %2 = vector.load %arg4[%c0_3, %c0_4] : memref<8x128xf32, #tpu.memory_space<vmem>>, vector<1x128xf32>
    %c1 = arith.constant 1 : index
    %c0_5 = arith.constant 0 : index
    %3 = vector.load %arg4[%c1, %c0_5] : memref<8x128xf32, #tpu.memory_space<vmem>>, vector<1x128xf32>
    %c2 = arith.constant 2 : index
    %c0_6 = arith.constant 0 : index
    %4 = vector.load %arg4[%c2, %c0_6] : memref<8x128xf32, #tpu.memory_space<vmem>>, vector<1x128xf32>
    %c0_7 = arith.constant 0 : index
    %c0_8 = arith.constant 0 : index
    %5 = vector.load %arg1[%c0_7, %c0_8] : memref<16x128xbf16, #tpu.memory_space<vmem>>, vector<16x128xbf16>
    %6 = arith.extf %5 : vector<16x128xbf16> to vector<16x128xf32>
    %cst = arith.constant dense<0.000000e+00> : vector<16xf32>
    %7 = vector.multi_reduction <add>, %6, %cst [1] : vector<16x128xf32> to vector<16xf32>
    %8 = vector.shape_cast %7 : vector<16xf32> to vector<16x1xf32>
    %cst_9 = arith.constant 7.812500e-03 : f32
    %9 = vector.broadcast %cst_9 : f32 to vector<16x1xf32>
    %10 = arith.mulf %8, %9 : vector<16x1xf32>
    %11 = arith.mulf %6, %6 : vector<16x128xf32>
    %cst_10 = arith.constant dense<0.000000e+00> : vector<16xf32>
    %12 = vector.multi_reduction <add>, %11, %cst_10 [1] : vector<16x128xf32> to vector<16xf32>
    %13 = vector.shape_cast %12 : vector<16xf32> to vector<16x1xf32>
    %cst_11 = arith.constant 7.812500e-03 : f32
    %14 = vector.broadcast %cst_11 : f32 to vector<16x1xf32>
    %15 = arith.mulf %13, %14 : vector<16x1xf32>
    %16 = arith.mulf %10, %10 : vector<16x1xf32>
    %17 = arith.subf %15, %16 : vector<16x1xf32>
    %cst_12 = arith.constant 0.000000e+00 : f32
    %18 = vector.broadcast %cst_12 : f32 to vector<16x1xf32>
    %19 = arith.maximumf %17, %18 : vector<16x1xf32>
    %20 = vector.broadcast %10 : vector<16x1xf32> to vector<16x128xf32>
    %21 = arith.subf %6, %20 : vector<16x128xf32>
    %cst_13 = arith.constant 9.99999974E-6 : f32
    %22 = vector.broadcast %cst_13 : f32 to vector<16x1xf32>
    %23 = arith.addf %19, %22 : vector<16x1xf32>
    %24 = math.rsqrt %23 : vector<16x1xf32>
    %25 = vector.broadcast %24 : vector<16x1xf32> to vector<16x128xf32>
    %26 = arith.mulf %21, %25 : vector<16x128xf32>
    %27 = arith.truncf %26 : vector<16x128xf32> to vector<16x128xbf16>
    %cst_14 = arith.constant dense<0.000000e+00> : vector<16x128xf32>
    %28 = tpu.matmul %27, %0, %cst_14 {dimension_numbers = #tpu.dot_dimension_numbers<[1], [0], [0], [1], [0, 0, 1, 1], [], []>} : vector<16x128xbf16>, vector<128x128xbf16>, vector<16x128xf32> -> vector<16x128xf32>
    %29 = vector.broadcast %2 : vector<1x128xf32> to vector<16x128xf32>
    %30 = arith.addf %28, %29 : vector<16x128xf32>
    %cst_15 = arith.constant dense<0.000000e+00> : vector<16xf32>
    %31 = vector.multi_reduction <add>, %30, %cst_15 [1] : vector<16x128xf32> to vector<16xf32>
    %32 = vector.shape_cast %31 : vector<16xf32> to vector<16x1xf32>
    %cst_16 = arith.constant 7.812500e-03 : f32
    %33 = vector.broadcast %cst_16 : f32 to vector<16x1xf32>
    %34 = arith.mulf %32, %33 : vector<16x1xf32>
    %35 = arith.mulf %30, %30 : vector<16x128xf32>
    %cst_17 = arith.constant dense<0.000000e+00> : vector<16xf32>
    %36 = vector.multi_reduction <add>, %35, %cst_17 [1] : vector<16x128xf32> to vector<16xf32>
    %37 = vector.shape_cast %36 : vector<16xf32> to vector<16x1xf32>
    %cst_18 = arith.constant 7.812500e-03 : f32
    %38 = vector.broadcast %cst_18 : f32 to vector<16x1xf32>
    %39 = arith.mulf %37, %38 : vector<16x1xf32>
    %40 = arith.mulf %34, %34 : vector<16x1xf32>
    %41 = arith.subf %39, %40 : vector<16x1xf32>
    %cst_19 = arith.constant 0.000000e+00 : f32
    %42 = vector.broadcast %cst_19 : f32 to vector<16x1xf32>
    %43 = arith.maximumf %41, %42 : vector<16x1xf32>
    %44 = vector.broadcast %34 : vector<16x1xf32> to vector<16x128xf32>
    %45 = arith.subf %30, %44 : vector<16x128xf32>
    %cst_20 = arith.constant 9.99999974E-6 : f32
    %46 = vector.broadcast %cst_20 : f32 to vector<16x1xf32>
    %47 = arith.addf %43, %46 : vector<16x1xf32>
    %48 = math.rsqrt %47 : vector<16x1xf32>
    %49 = vector.broadcast %48 : vector<16x1xf32> to vector<16x128xf32>
    %50 = arith.mulf %45, %49 : vector<16x128xf32>
    %51 = vector.broadcast %3 : vector<1x128xf32> to vector<16x128xf32>
    %52 = arith.mulf %50, %51 : vector<16x128xf32>
    %53 = vector.broadcast %4 : vector<1x128xf32> to vector<16x128xf32>
    %54 = arith.addf %52, %53 : vector<16x128xf32>
    %55 = arith.truncf %54 : vector<16x128xf32> to vector<16x128xbf16>
    %56 = arith.addf %5, %55 : vector<16x128xbf16>
    %cst_21 = arith.constant dense<0.000000e+00> : vector<16x128xf32>
    %57 = tpu.matmul %56, %1, %cst_21 {dimension_numbers = #tpu.dot_dimension_numbers<[1], [0], [0], [1], [0, 0, 1, 1], [], []>} : vector<16x128xbf16>, vector<128x128xbf16>, vector<16x128xf32> -> vector<16x128xf32>
    %58 = arith.truncf %57 : vector<16x128xf32> to vector<16x128xbf16>
    %c0_22 = arith.constant 0 : index
    %c0_23 = arith.constant 0 : index
    %59 = vector.load %arg5[%c0_22, %c0_23] : memref<16x128xbf16, #tpu.memory_space<vmem>>, vector<16x128xbf16>
    tpu.vector_store %arg5[%c0_22, %c0_23], %58 {strides = array<i32>} : memref<16x128xbf16, #tpu.memory_space<vmem>>, vector<16x128xbf16>,
    return
  }
  func.func @transform_0(%arg0: i32) -> (i32, i32) {
    %c0_i32 = arith.constant 0 : i32
    %c0_i32_0 = arith.constant 0 : i32
    return %arg0, %c0_i32 : i32, i32
  }
  func.func @transform_1(%arg0: i32) -> (i32, i32) {
    %c0_i32 = arith.constant 0 : i32
    %c0_i32_0 = arith.constant 0 : i32
    %c0_i32_1 = arith.constant 0 : i32
    return %c0_i32, %c0_i32_0 : i32, i32
  }
  func.func @transform_2(%arg0: i32) -> (i32, i32) {
    %c0_i32 = arith.constant 0 : i32
    %c0_i32_0 = arith.constant 0 : i32
    %c0_i32_1 = arith.constant 0 : i32
    return %c0_i32, %c0_i32_0 : i32, i32
  }
  func.func @transform_3(%arg0: i32) -> (i32, i32) {
    %c0_i32 = arith.constant 0 : i32
    %c0_i32_0 = arith.constant 0 : i32
    %c0_i32_1 = arith.constant 0 : i32
    return %c0_i32, %c0_i32_0 : i32, i32
  }
  func.func @transform_4(%arg0: i32) -> (i32, i32) {
    %c0_i32 = arith.constant 0 : i32
    %c0_i32_0 = arith.constant 0 : i32
    return %arg0, %c0_i32 : i32, i32
  }
}

</mosaic_0001>

<bundles_post_ra>
// kernel: tpu_custom_call.1
= control target key start
LH: loop header
LB: loop body
LE: loop exit
PB: predicated region body
PF: predicated region fallthrough
CT: control target
= control target key end

     0   :  { %9 = vsyncpa [#allocation3], 0  ;;  %s746_s0 = inlined_call_operand.hbm [shape: bf16[16,128], index: 0, kind: input, shape index: {}]   ;;  %s747_s1 = inlined_call_operand.hbm [shape: bf16[128,128], index: 1, kind: input, shape index: {}]   ;;  %s748_s2 = inlined_call_operand.hbm [shape: bf16[128,128], index: 2, kind: input, shape index: {}]   ;;  %s749_s3 = inlined_call_operand.vmem [shape: f32[8,128], index: 3, kind: input, shape index: {}]   ;;  %s750_s4 = inlined_call_operand.hbm [shape: bf16[16,128], index: 4, kind: output, shape index: {}]  }
   0x1   :  { %10 = vsyncpa [#allocation6], 0 }
   0x2   :  { %11 = vsyncpa [#allocation4], 0  ;;  %s611_s15 = smov [#allocation5]   ;;  %s612_s17 = smov [#allocation2]  }
   0x3   :  { %s29_s16 = sshll.u32 %s611_s15, 4  ;;  %s17_s18 = sshll.u32 %s612_s17, 4  ;;  %s30_s16 = int_to_ptr.vmem [resolvable:$true] %s29_s16  ;;  %s644_s18 = int_to_ptr.vmem [resolvable:$true] %s17_s18 }
   0x4   :  { %s517_s21 = scalar_lea.hbm %s747_s1, 1024 }
   0x5   :  { %p518_p0 = scmp.ne.s32.totalorder %s747_s1, %s517_s21  ;;  %p521_p1 = scmp.lt.u32.totalorder %s517_s21, %s747_s1 }
   0x7   :  { %p523_p2 = pnand %p521_p1, %p518_p0 }
   0x9   :  { %526 = shalt.err (!%p523_p2)
}
   0xa   :  { %s527_s26 = scalar_lea.vmem %s30_s16, 1024  ;;  %p532_p4 = scmp.lt.s32.totalorder %s30_s16, %s30_s16 }
   0xb   :  { %p528_p3 = scmp.ne.s32.totalorder %s30_s16, %s527_s26  ;;  %p533_p5 = scmp.lt.s32.totalorder %s527_s26, %s527_s26 }
   0xd   :  { %p534_p6 = por %p533_p5, %p532_p4 }
   0xf   :  { %p535_p7 = pnand %p534_p6, %p528_p3 }
  0x11   :  { %538 = shalt.err (!%p535_p7)
}
  0x12   :  { %s613_s27 = smov 64   ;;  %s614_s28 = smov 4  }
  0x13   :  { %35 = dma.hbm_to_vmem [thread:$0]  %s747_s1, 1024, %s30_s16, [#allocation6], %s613_s27, %s613_s27, %s614_s28  }
  0x14   :  { %s539_s7 = scalar_lea.hbm %s746_s0, 128 }
  0x15   :  { %p540_p8 = scmp.ne.s32.totalorder %s746_s0, %s539_s7  ;;  %p543_p9 = scmp.lt.u32.totalorder %s539_s7, %s746_s0 }
  0x17   :  { %p545_p10 = pnand %p543_p9, %p540_p8 }
  0x19   :  { %548 = shalt.err (!%p545_p10)
}
  0x1a   :  { %s549_s12 = scalar_lea.vmem %s644_s18, 128  ;;  %p554_p12 = scmp.lt.s32.totalorder %s644_s18, %s644_s18 }
  0x1b   :  { %p550_p11 = scmp.ne.s32.totalorder %s644_s18, %s549_s12  ;;  %p555_p13 = scmp.lt.s32.totalorder %s549_s12, %s549_s12 }
  0x1d   :  { %p556_p0 = por %p555_p13, %p554_p12 }
  0x1f   :  { %p557_p1 = pnand %p556_p0, %p550_p11 }
  0x21   :  { %560 = shalt.err (!%p557_p1)
}
  0x22   :  { %23 = dma.hbm_to_vmem [thread:$0]  %s746_s0, 128, %s644_s18, [#allocation3], %s613_s27, %s613_s27, %s614_s28  }
  0x23   :  { %s615_s14 = smov [#allocation7]   ;;  %s561_s19 = scalar_lea.hbm %s748_s2, 1024 }
  0x24   :  { %s41_s15 = sshll.u32 %s615_s14, 4  ;;  %p562_p2 = scmp.ne.s32.totalorder %s748_s2, %s561_s19  ;;  %s42_s15 = int_to_ptr.vmem [resolvable:$true] %s41_s15 }
  0x25   :  { %p565_p3 = scmp.lt.u32.totalorder %s561_s19, %s748_s2 }
  0x27   :  { %p567_p4 = pnand %p565_p3, %p562_p2 }
  0x29   :  { %570 = shalt.err (!%p567_p4)
}
  0x2a   :  { %s571_s24 = scalar_lea.vmem %s42_s15, 1024  ;;  %p576_p6 = scmp.lt.s32.totalorder %s42_s15, %s42_s15 }
  0x2b   :  { %p572_p5 = scmp.ne.s32.totalorder %s42_s15, %s571_s24  ;;  %p577_p7 = scmp.lt.s32.totalorder %s571_s24, %s571_s24 }
  0x2d   :  { %p578_p8 = por %p577_p7, %p576_p6 }
  0x2f   :  { %p579_p9 = pnand %p578_p8, %p572_p5 }
  0x31   :  { %582 = shalt.err (!%p579_p9)
}
  0x32   :  { %47 = dma.hbm_to_vmem [thread:$0]  %s748_s2, 1024, %s42_s15, [#allocation6], %s613_s27, %s613_s27, %s614_s28  }
  0x33   :  { %605 = dma.done.wait [#allocation3], 128  }
  0x34   :  { %606 = vsyncadd [#allocation3], 4294967168 }
  0x35   :  { %607 = dma.done.wait [#allocation6], 2048  }
  0x36   :  { %608 = vsyncadd [#allocation6], 4294965248  ;;  %v616_v0 = vmov 0.0   ;;  %v698_v1 = vld [vmem:[#allocation2] sm:$0xf]  ;;  %v493_v5 = vld [vmem:[#allocation5] sm:$0xff]  }
  0x37   :  { %445 = vmatprep.subr.bf16.mxu0 %v616_v0  ;;  %465 = vmatprep.subr.bf16.mxu1 %v616_v0  ;;  %v700_v2 = vld [vmem:[#allocation2 + $0x4] sm:$0xf]  ;;  %v97_v3 = vunpack.c.l.bf16 %v698_v1  ;;  %v494_v8 = vld [vmem:[#allocation5 + $0x8] sm:$0xff]   ;;  %v495_v9 = vld [vmem:[#allocation5 + $0x10] sm:$0xff]   ;;  %vm617_vm0 = vmmov 0   ;;  %s618_s6 = smov [#allocation8]  }
  0x38   :  { %v98_v4 = vunpack.c.l.bf16 %v700_v2  ;;  %446 = vmatpush3.bf16.msra.mxu0 %v493_v5  ;;  %v496_v10 = vld [vmem:[#allocation5 + $0x18] sm:$0xff]   ;;  %v497_v11 = vld [vmem:[#allocation5 + $0x20] sm:$0xff]   ;;  %v498_v12 = vld [vmem:[#allocation5 + $0x28] sm:$0xff]   ;;  %461 = vmatprep.mubr.msk.bf16.mxu0 %vm617_vm0, %v616_v0  ;;  %s381_s7 = sshll.u32 %s618_s6, 4  ;;  %s382_s7 = int_to_ptr.vmem [resolvable:$true] %s381_s7 }
  0x39   :  { %99 = vadd.xlane.f32.xlu0 %v97_v3  ;;  %v105_v6 = vmul.f32 %v97_v3, %v97_v3  ;;  %447 = vmatprep.subr.bf16.mxu0 %v616_v0  ;;  %v499_v13 = vld [vmem:[#allocation5 + $0x30] sm:$0xff]   ;;  %v500_v14 = vld [vmem:[#allocation5 + $0x38] sm:$0xff]   ;;  %v501_v47 = vld [vmem:[#allocation7] sm:$0xff]   ;;  %p588_p11 = scmp.lt.s32.totalorder %s382_s7, %s382_s7 }
  0x3a   :  { %v106_v7 = vmul.f32 %v98_v4, %v98_v4  ;;  %481 = vmatprep.mubr.msk.bf16.mxu1 %vm617_vm0, %v616_v0  ;;  %v394_v38 = vld [vmem:[%s749_s3] ss:$0 sm:$0xff]  ;;  %466 = vmatpush3.bf16.msra.mxu1 %v501_v47  ;;  %v502_v48 = vld [vmem:[#allocation7 + $0x8] sm:$0xff]   ;;  %v503_v49 = vld [vmem:[#allocation7 + $0x10] sm:$0xff]  }
  0x3b   :  { %107 = vadd.xlane.f32.xlu1 %v105_v6  ;;  %467 = vmatprep.subr.bf16.mxu1 %v616_v0  ;;  %v504_v50 = vld [vmem:[#allocation7 + $0x18] sm:$0xff]   ;;  %v505_v51 = vld [vmem:[#allocation7 + $0x20] sm:$0xff]   ;;  %v506_v52 = vld [vmem:[#allocation7 + $0x28] sm:$0xff]  }
  0x3c   :  { %448 = vmatpush3.bf16.msra.mxu0 %v494_v8  ;;  %v507_v53 = vld [vmem:[#allocation7 + $0x30] sm:$0xff]   ;;  %v508_v54 = vld [vmem:[#allocation7 + $0x38] sm:$0xff]  }
  0x3d   :  { %101 = vadd.xlane.f32.xlu0 %v98_v4  ;;  %449 = vmatprep.subr.bf16.mxu0 %v616_v0 }
  0x3e   :  { %468 = vmatpush3.bf16.msra.mxu1 %v502_v48 }
  0x3f   :  { %109 = vadd.xlane.f32.xlu1 %v106_v7  ;;  %469 = vmatprep.subr.bf16.mxu1 %v616_v0 }
  0x40   :  { %450 = vmatpush3.bf16.msra.mxu0 %v495_v9 }
  0x41   :  { %451 = vmatprep.subr.bf16.mxu0 %v616_v0 }
  0x42   :  { %470 = vmatpush3.bf16.msra.mxu1 %v503_v49 }
  0x43   :  { %471 = vmatprep.subr.bf16.mxu1 %v616_v0 }
  0x44   :  { %452 = vmatpush3.bf16.msra.mxu0 %v496_v10 }
  0x45   :  { %453 = vmatprep.subr.bf16.mxu0 %v616_v0 }
  0x46   :  { %472 = vmatpush3.bf16.msra.mxu1 %v504_v50 }
  0x47   :  { %473 = vmatprep.subr.bf16.mxu1 %v616_v0 }
  0x48   :  { %454 = vmatpush3.bf16.msra.mxu0 %v497_v11  ;;  %v403_v11 = vld [vmem:[%s749_s3 + $0x1] ss:$0 sm:$0xff] }
  0x49   :  { %455 = vmatprep.subr.bf16.mxu0 %v616_v0 }
  0x4a   :  { %474 = vmatpush3.bf16.msra.mxu1 %v505_v51 }
  0x4b   :  { %475 = vmatprep.subr.bf16.mxu1 %v616_v0 }
  0x4c   :  { %456 = vmatpush3.bf16.msra.mxu0 %v498_v12 }
  0x4d   :  { %457 = vmatprep.subr.bf16.mxu0 %v616_v0 }
  0x4e   :  { %476 = vmatpush3.bf16.msra.mxu1 %v506_v52 }
  0x4f   :  { %477 = vmatprep.subr.bf16.mxu1 %v616_v0 }
  0x50   :  { %458 = vmatpush3.bf16.msra.mxu0 %v499_v13 }
  0x51   :  { %459 = vmatprep.subr.bf16.mxu0 %v616_v0 }
  0x52   :  { %478 = vmatpush3.bf16.msra.mxu1 %v507_v53 }
  0x53   :  { %479 = vmatprep.subr.bf16.mxu1 %v616_v0 }
  0x54   :  { %460 = vmatpush3.bf16.msra.mxu0 %v500_v14 }
  0x56   :  { %480 = vmatpush3.bf16.msra.mxu1 %v508_v54 }
  0xc6   :  { %v100_v15 = vpop.xlane.xlu0 %99 }
  0xc7   :  { %v103_v16 = vmul.f32 0.0078125, %v100_v15  ;;  %v404_v15 = vld [vmem:[%s749_s3 + $0x2] ss:$0 sm:$0xff]  ;;  %s583_s3 = scalar_lea.vmem %s382_s7, 128 }
  0xc8   :  { %v108_v17 = vpop.xlane.xlu1 %107  ;;  %p584_p10 = scmp.ne.s32.totalorder %s382_s7, %s583_s3  ;;  %p589_p12 = scmp.lt.s32.totalorder %s583_s3, %s583_s3 }
  0xc9   :  { %v113_v18 = vmul.f32 %v103_v16, %v103_v16  ;;  %v111_v19 = vmul.f32 0.0078125, %v108_v17  ;;  %v119_v32 = vsub.f32 %v97_v3, %v103_v16 }
  0xca   :  { %v102_v20 = vpop.xlane.xlu0 %101  ;;  %p590_p13 = por %p589_p12, %p588_p11 }
  0xcb   :  { %v115_v21 = vsub.f32 %v111_v19, %v113_v18  ;;  %v104_v22 = vmul.f32 0.0078125, %v102_v20 }
  0xcc   :  { %v110_v23 = vpop.xlane.xlu1 %109  ;;  %p591_p0 = pnand %p590_p13, %p584_p10 }
  0xcd   :  { %v117_v24 = vmax.f32 %v115_v21, 0.0  ;;  %v114_v25 = vmul.f32 %v104_v22, %v104_v22  ;;  %v112_v26 = vmul.f32 0.0078125, %v110_v23  ;;  %v120_v33 = vsub.f32 %v98_v4, %v104_v22 }
  0xcf   :  { %v121_v27 = vadd.f32 1e-05, %v117_v24  ;;  %v116_v28 = vsub.f32 %v112_v26, %v114_v25 }
  0xd1   :  { %v118_v29 = vmax.f32 %v116_v28, 0.0  ;;  %509 = vrsqrt.f32 %v121_v27 }
  0xd3   :  { %v122_v30 = vadd.f32 1e-05, %v118_v29 }
  0xd5   :  { %511 = vrsqrt.f32 %v122_v30 }
  0xdb   :  { %v510_v31 = vpop.eup %509 }
  0xdc   :  { %v125_v35 = vmul.f32 %v510_v31, %v119_v32 }
  0xdf   :  { %v512_v34 = vpop.eup %511 }
  0xe0   :  { %v126_v36 = vmul.f32 %v512_v34, %v120_v33 }
  0xe2   :  { %v127_v37 = vpack.c.bf16 %v126_v36, %v125_v35 }
  0xe4   :  { %462 = vmatmul.mubr.bf16.vlgmr.msra.gmra.mrb[0].mxu0 %v127_v37 }
 0x1b7   :  { %v214_v39 = vpop.f32.mrb[0].mxu0 }
 0x1b8   :  { %v215_v40 = vadd.f32 %v394_v38, %v214_v39  ;;  %v463_v41 = vpop.f32.mrb[1].mxu0 }
 0x1b9   :  { %v217_v42 = vpop.f32.mrb[2].mxu0 }
 0x1ba   :  { %v218_v43 = vadd.f32 %v394_v38, %v217_v42  ;;  %221 = vadd.xlane.f32.xlu0 %v215_v40  ;;  %v464_v44 = vpop.f32.mrb[3].mxu0  ;;  %v227_v45 = vmul.f32 %v215_v40, %v215_v40 }
 0x1bc   :  { %223 = vadd.xlane.f32.xlu1 %v218_v43  ;;  %v228_v46 = vmul.f32 %v218_v43, %v218_v43 }
 0x1be   :  { %229 = vadd.xlane.f32.xlu0 %v227_v45 }
 0x1c0   :  { %231 = vadd.xlane.f32.xlu1 %v228_v46 }
 0x247   :  { %v222_v55 = vpop.xlane.xlu0 %221 }
 0x248   :  { %v225_v56 = vmul.f32 0.0078125, %v222_v55 }
 0x249   :  { %v224_v57 = vpop.xlane.xlu1 %223 }
 0x24a   :  { %v226_v58 = vmul.f32 0.0078125, %v224_v57  ;;  %v235_v60 = vmul.f32 %v225_v56, %v225_v56  ;;  %v241_v0 = vsub.f32 %v215_v40, %v225_v56 }
 0x24b   :  { %v230_v59 = vpop.xlane.xlu0 %229 }
 0x24c   :  { %v233_v61 = vmul.f32 0.0078125, %v230_v59  ;;  %v236_v63 = vmul.f32 %v226_v58, %v226_v58  ;;  %v242_v12 = vsub.f32 %v218_v43, %v226_v58 }
 0x24d   :  { %v232_v62 = vpop.xlane.xlu1 %231 }
 0x24e   :  { %v237_v3 = vsub.f32 %v233_v61, %v235_v60  ;;  %v234_v4 = vmul.f32 0.0078125, %v232_v62 }
 0x250   :  { %v239_v5 = vmax.f32 %v237_v3, 0.0  ;;  %v238_v6 = vsub.f32 %v234_v4, %v236_v63 }
 0x252   :  { %v243_v7 = vadd.f32 1e-05, %v239_v5  ;;  %v240_v8 = vmax.f32 %v238_v6, 0.0 }
 0x254   :  { %513 = vrsqrt.f32 %v243_v7  ;;  %v244_v9 = vadd.f32 1e-05, %v240_v8 }
 0x256   :  { %515 = vrsqrt.f32 %v244_v9 }
 0x25e   :  { %v514_v10 = vpop.eup %513 }
 0x25f   :  { %v247_v13 = vmul.f32 %v514_v10, %v241_v0 }
 0x260   :  { %v516_v14 = vpop.eup %515 }
 0x261   :  { %v248_v16 = vmul.f32 %v516_v14, %v242_v12  ;;  %v253_v17 = vmul.f32 %v403_v11, %v247_v13 }
 0x263   :  { %v254_v18 = vmul.f32 %v403_v11, %v248_v16  ;;  %v259_v19 = vadd.f32 %v404_v15, %v253_v17 }
 0x265   :  { %v260_v20 = vadd.f32 %v404_v15, %v254_v18  ;;  %v418_v21 = vpack.c.bf16 %v259_v19, %v259_v19 }
 0x267   :  { %v419_v22 = vpack.c.bf16 %v260_v20, %v260_v20  ;;  %v269_v23 = vadd.bf16 %v418_v21, %v698_v1 }
 0x269   :  { %v270_v24 = vadd.bf16 %v419_v22, %v700_v2 }
 0x26b   :  { %v407_v25 = vcombine.low %v269_v23, %v270_v24 }
 0x26d   :  { %482 = vmatmul.mubr.bf16.vlgmr.msra.gmra.mrb[0].mxu1 %v407_v25 }
 0x340   :  { %v359_v26 = vpop.f32.mrb[0].mxu1 }
 0x341   :  { %v483_v27 = vpop.f32.mrb[1].mxu1 }
 0x342   :  { %v362_v28 = vpop.f32.mrb[2].mxu1 }
 0x343   :  { %v425_v29 = vpack.c.bf16 %v362_v28, %v359_v26  ;;  %v484_v30 = vpop.f32.mrb[3].mxu1 }
 0x345   :  { %426 = vst [vmem:[#allocation8] sm:$0xff] %v425_v29  }
 0x346   :  { %594 = shalt.err (!%p591_p0)
}
 0x347   :  { %s595_s10 = scalar_lea.hbm %s750_s4, 128 }
 0x348   :  { %p596_p1 = scmp.ne.s32.totalorder %s750_s4, %s595_s10  ;;  %p599_p2 = scmp.lt.u32.totalorder %s595_s10, %s750_s4 }
 0x34a   :  { %p601_p3 = pnand %p599_p2, %p596_p1 }
 0x34c   :  { %604 = shalt.err (!%p601_p3)
}
 0x34d   :  { %387 = dma.vmem_to_hbm [thread:$0]  %s382_s7, 128, %s750_s4, [#allocation4], %s613_s27, %s613_s27, %s614_s28  }
 0x34e   :  { %609 = dma.done.wait [#allocation4], 128  }
 0x34f   :  { %610 = vsyncadd [#allocation4], 4294967168 }
 0x350   :  { %391 = vsyncpa [#allocation3], 1 }
 0x351   :  { %392 = vsyncpa [#allocation6], 1 }
 0x352   :  { %393 = vsyncpa [#allocation4], 1 }

</bundles_post_ra>
